<compile_context>
chip_gen: v5e
topology: v5e:2x2
jax: 0.10.0
libtpu: 0.0.40
codegen_flags: <defaults>
</compile_context>

<pallas_src>
import jax
import jax.numpy as jnp
import numpy as np
from jax.experimental import pallas as pl
from jax.experimental.pallas import tpu as pltpu

LOG_SIG_MAX = 2.0
LOG_SIG_MIN = -5.0

ROW_ALIGN = 16  # bf16 sublane tile (also a multiple of the f32 sublane tile 8)


def _round_up(x, m):
    return ((x + m - 1) // m) * m


def _cdiv(a, b):
    return -(-a // b)


# ----------------------------- Pallas kernel --------------------------------
def _policy_kernel(state_ref,
                   w1_ref, b1_ref,
                   w2x_ref, w2s_ref, b2_ref,
                   w3x_ref, w3s_ref, b3_ref,
                   w4x_ref, w4s_ref, b4_ref,
                   wh_ref, bh_ref,
                   out_ref):
    """One batch tile of the D2RL Gaussian policy forward (num_layers=4)."""
    f32 = jnp.float32
    s = state_ref[...]                                     # (TB, NI)

    # State contributions: cat([x, s]) @ W == x @ W_x + s @ W_s.  These three
    # matmuls have no inter-layer dependency, so they can issue while the
    # dependent x-chain below runs.
    sc2 = jnp.dot(s, w2s_ref[...], preferred_element_type=f32) + b2_ref[...]
    sc3 = jnp.dot(s, w3s_ref[...], preferred_element_type=f32) + b3_ref[...]
    sc4 = jnp.dot(s, w4s_ref[...], preferred_element_type=f32) + b4_ref[...]

    # linear1 + relu
    x = jnp.maximum(
        jnp.dot(s, w1_ref[...], preferred_element_type=f32) + b1_ref[...], 0.0)

    def d2rl(x, wx_ref, sc):
        h = jnp.dot(x.astype(wx_ref.dtype), wx_ref[...],
                    preferred_element_type=f32) + sc
        return jnp.maximum(h, 0.0)

    x = d2rl(x, w2x_ref, sc2)     # linear2
    x = d2rl(x, w3x_ref, sc3)     # linear3
    x = d2rl(x, w4x_ref, sc4)     # linear4

    # Fused heads: lanes [0:A) = mean, [A:2A) = log_std, rest zero-pad.
    out_ref[...] = (jnp.dot(x.astype(wh_ref.dtype), wh_ref[...],
                            preferred_element_type=f32) + bh_ref[...])


# ------------------------------- wrapper -------------------------------------
def d2rl_gaussian_policy_forward(state, prepared, num_actions,
                                 block_rows=2048, vmem_limit_bytes=None):
    """state: (B, 1, num_inputs) -> (mean, log_std), each (B, num_actions)."""
    in_dtype = prepared["w1"].dtype
    state2d = jnp.squeeze(state, axis=1).astype(in_dtype)   # (B, NI)
    B, NI = state2d.shape
    head_w = prepared["w_heads"].shape[1]                    # round_up(2A, 8)

    # Batch tiling: rows aligned to 16; tile size from ceil-div so padding
    # waste stays bounded; force >= 2 grid steps when possible so the
    # "parallel" axis shards across v7x's two TensorCores.
    Bp0 = _round_up(B, ROW_ALIGN)
    n_tiles = max(1, _cdiv(Bp0, block_rows))
    if Bp0 >= 2 * ROW_ALIGN:
        n_tiles = max(n_tiles, 2)
    TB = _round_up(_cdiv(Bp0, n_tiles), ROW_ALIGN)
    Bp = _round_up(Bp0, TB)
    if Bp != B:
        state2d = jnp.pad(state2d, ((0, Bp - B), (0, 0)))
    grid = (Bp // TB,)

    weight_args = (
        prepared["w1"], prepared["b1"],
        prepared["w2x"], prepared["w2s"], prepared["b2"],
        prepared["w3x"], prepared["w3s"], prepared["b3"],
        prepared["w4x"], prepared["w4s"], prepared["b4"],
        prepared["w_heads"], prepared["b_heads"],
    )
    # Grid-invariant (constant index_map) weights/biases stay VMEM-resident.
    weight_specs = [pl.BlockSpec(w.shape, lambda i: (0, 0)) for w in weight_args]

    cp_kwargs = dict(dimension_semantics=("parallel",))
    if vmem_limit_bytes is not None:
        # Raise for large hidden_dim on v7x (64 MiB VMEM) / v5e (16 MiB default
        # scoped limit) so the resident weights + batch tiles fit comfortably.
        cp_kwargs["vmem_limit_bytes"] = vmem_limit_bytes

    out = pl.pallas_call(
        _policy_kernel,
        out_shape=jax.ShapeDtypeStruct((Bp, head_w), jnp.float32),
        grid_spec=pltpu.PrefetchScalarGridSpec(
            num_scalar_prefetch=0,
            grid=grid,
            in_specs=[pl.BlockSpec((TB, NI), lambda i: (i, 0))] + weight_specs,
            out_specs=pl.BlockSpec((TB, head_w), lambda i: (i, 0))),
        compiler_params=pltpu.CompilerParams(**cp_kwargs),
    )(state2d, *weight_args)

    mean = out[:B, :num_actions]
    # Clamp only the log_std slice here (cheaper than masking inside the kernel
    # and keeps the kernel's head store a single unconditional write).
    log_std = jnp.clip(out[:B, num_actions:2 * num_actions],
                       LOG_SIG_MIN, LOG_SIG_MAX)
    return mean, log_std


# ----------------------- deterministic parameter init ------------------------
def _xavier_uniform(key, fan_in, fan_out):
    # Matches torch.nn.init.xavier_uniform_ (gain=1) on a (out, in) weight,
    # returned pre-transposed as (in, out).
    limit = float(np.sqrt(6.0 / (fan_in + fan_out)))
    return jax.random.uniform(key, (fan_in, fan_out), jnp.float32, -limit, limit)


def init_params(key, num_inputs, num_actions, hidden_dim):
    in_dim = hidden_dim + num_inputs
    keys = jax.random.split(key, 6)
    zeros = lambda n: jnp.zeros((1, n), jnp.float32)
    return {
        "w1": _xavier_uniform(keys[0], num_inputs, hidden_dim), "b1": zeros(hidden_dim),
        "w2": _xavier_uniform(keys[1], in_dim, hidden_dim),     "b2": zeros(hidden_dim),
        "w3": _xavier_uniform(keys[2], in_dim, hidden_dim),     "b3": zeros(hidden_dim),
        "w4": _xavier_uniform(keys[3], in_dim, hidden_dim),     "b4": zeros(hidden_dim),
        "wm": _xavier_uniform(keys[4], hidden_dim, num_actions), "bm": zeros(num_actions),
        "wls": _xavier_uniform(keys[5], hidden_dim, num_actions), "bls": zeros(num_actions),
    }


def prepare_params(params, weight_dtype=jnp.bfloat16):
    """One-time packing for the kernel (done at init, NOT per forward call):
      * split each D2RL weight into W_x = W[:H] and W_s = W[H:] (kernel never
        materialises cat([x, state]));
      * fuse the mean/log_std heads and zero-pad only to a multiple of 8 lanes
        (small HBM writeback, not 128-lane padded);
      * cast weights to bf16 (MXU-native) with f32 accumulation in the kernel;
        biases stay f32 so post-matmul VPU math is f32 (v5e has no bf16 VALU).
    """
    H = params["w1"].shape[1]
    A = params["wm"].shape[1]
    head_w = _round_up(2 * A, 8)
    w_heads = jnp.concatenate([params["wm"], params["wls"]], axis=1)
    b_heads = jnp.concatenate([params["bm"], params["bls"]], axis=1)
    w_heads = jnp.pad(w_heads, ((0, 0), (0, head_w - 2 * A)))
    b_heads = jnp.pad(b_heads, ((0, 0), (0, head_w - 2 * A)))
    prepared = {
        "w1": params["w1"].astype(weight_dtype),
        "b1": params["b1"],
        "w_heads": w_heads.astype(weight_dtype),
        "b_heads": b_heads,
    }
    for l in (2, 3, 4):
        w = params["w%d" % l]
        prepared["w%dx" % l] = w[:H, :].astype(weight_dtype)
        prepared["w%ds" % l] = w[H:, :].astype(weight_dtype)
        prepared["b%d" % l] = params["b%d" % l]
    return prepared


# ----------------------------- pure-JAX reference ----------------------------
def reference_forward(state, params):
    s = jnp.squeeze(state, axis=1)
    x = jax.nn.relu(s @ params["w1"] + params["b1"])
    x = jax.nn.relu(jnp.concatenate([x, s], axis=1) @ params["w2"] + params["b2"])
    x = jax.nn.relu(jnp.concatenate([x, s], axis=1) @ params["w3"] + params["b3"])
    x = jax.nn.relu(jnp.concatenate([x, s], axis=1) @ params["w4"] + params["b4"])
    mean = x @ params["wm"] + params["bm"]
    log_std = jnp.clip(x @ params["wls"] + params["bls"], LOG_SIG_MIN, LOG_SIG_MAX)
    return mean, log_std


if __name__ == "__main__":
    B, num_inputs, hidden_dim, num_actions = 2, 16, 32, 3   # num_layers = 4

    key = jax.random.PRNGKey(0)
    pkey, skey = jax.random.split(key)
    params = init_params(pkey, num_inputs, num_actions, hidden_dim)
    state = jax.random.normal(skey, (B, 1, num_inputs), jnp.float32)

    mean_ref, log_std_ref = reference_forward(state, params)

    # f32-weight path: tight check against the pure-JAX reference.
    prepared_f32 = prepare_params(params, weight_dtype=jnp.float32)
    mean, log_std = d2rl_gaussian_policy_forward(state, prepared_f32, num_actions)
    jax.block_until_ready((mean, log_std))
    np.testing.assert_allclose(np.asarray(mean), np.asarray(mean_ref),
                               rtol=1e-5, atol=1e-5)
    np.testing.assert_allclose(np.asarray(log_std), np.asarray(log_std_ref),
                               rtol=1e-5, atol=1e-5)

    # Default bf16-weight path (halves weight/input HBM+VMEM bytes, f32
    # accumulation on the MXU): relaxed tolerance vs the f32 reference.
    prepared_bf16 = prepare_params(params)
    mean_b, log_std_b = d2rl_gaussian_policy_forward(state, prepared_bf16,
                                                     num_actions)
    jax.block_until_ready((mean_b, log_std_b))
    np.testing.assert_allclose(np.asarray(mean_b), np.asarray(mean_ref),
                               rtol=5e-2, atol=5e-2)
    np.testing.assert_allclose(np.asarray(log_std_b), np.asarray(log_std_ref),
                               rtol=5e-2, atol=5e-2)

    # TODO(synk): num_layers values other than 4 (2/6/8) and the stochastic
    # sample() method (tanh-squashed Normal rsample + log_prob) are not part of
    # this forward kernel; they stay in plain JAX if needed.
    print("KERNEL_OK")
</pallas_src>

<mosaic_0001>
module attributes {stable_mosaic.version = 11 : i64} {
  func.func @_policy_kernel(%arg0: i32, %arg1: memref<16x16xf32, #tpu.memory_space<vmem>>, %arg2: memref<16x32xf32, #tpu.memory_space<vmem>>, %arg3: memref<1x32xf32, #tpu.memory_space<vmem>>, %arg4: memref<32x32xf32, #tpu.memory_space<vmem>>, %arg5: memref<16x32xf32, #tpu.memory_space<vmem>>, %arg6: memref<1x32xf32, #tpu.memory_space<vmem>>, %arg7: memref<32x32xf32, #tpu.memory_space<vmem>>, %arg8: memref<16x32xf32, #tpu.memory_space<vmem>>, %arg9: memref<1x32xf32, #tpu.memory_space<vmem>>, %arg10: memref<32x32xf32, #tpu.memory_space<vmem>>, %arg11: memref<16x32xf32, #tpu.memory_space<vmem>>, %arg12: memref<1x32xf32, #tpu.memory_space<vmem>>, %arg13: memref<32x8xf32, #tpu.memory_space<vmem>>, %arg14: memref<1x8xf32, #tpu.memory_space<vmem>>, %arg15: memref<16x8xf32, #tpu.memory_space<vmem>>) attributes {dimension_semantics = [#tpu.dimension_semantics<parallel>], iteration_bounds = array<i64: 1>, scalar_prefetch = 0 : i64, scratch_operands = 0 : i64, tpu.core_type = #tpu.core_type<tc>, window_params = [{transform_indices = @transform_0, window_bounds = array<i64: 16, 16>}, {pipeline_mode = #tpu.pipeline_mode<synchronous>, transform_indices = @transform_1, window_bounds = array<i64: 16, 32>}, {pipeline_mode = #tpu.pipeline_mode<synchronous>, transform_indices = @transform_2, window_bounds = array<i64: 1, 32>}, {pipeline_mode = #tpu.pipeline_mode<synchronous>, transform_indices = @transform_3, window_bounds = array<i64: 32, 32>}, {pipeline_mode = #tpu.pipeline_mode<synchronous>, transform_indices = @transform_4, window_bounds = array<i64: 16, 32>}, {pipeline_mode = #tpu.pipeline_mode<synchronous>, transform_indices = @transform_5, window_bounds = array<i64: 1, 32>}, {pipeline_mode = #tpu.pipeline_mode<synchronous>, transform_indices = @transform_6, window_bounds = array<i64: 32, 32>}, {pipeline_mode = #tpu.pipeline_mode<synchronous>, transform_indices = @transform_7, window_bounds = array<i64: 16, 32>}, {pipeline_mode = #tpu.pipeline_mode<synchronous>, transform_indices = @transform_8, window_bounds = array<i64: 1, 32>}, {pipeline_mode = #tpu.pipeline_mode<synchronous>, transform_indices = @transform_9, window_bounds = array<i64: 32, 32>}, {pipeline_mode = #tpu.pipeline_mode<synchronous>, transform_indices = @transform_10, window_bounds = array<i64: 16, 32>}, {pipeline_mode = #tpu.pipeline_mode<synchronous>, transform_indices = @transform_11, window_bounds = array<i64: 1, 32>}, {pipeline_mode = #tpu.pipeline_mode<synchronous>, transform_indices = @transform_12, window_bounds = array<i64: 32, 8>}, {pipeline_mode = #tpu.pipeline_mode<synchronous>, transform_indices = @transform_13, window_bounds = array<i64: 1, 8>}, {transform_indices = @transform_14, window_bounds = array<i64: 16, 8>}]} {
    %c0 = arith.constant 0 : index
    %c0_0 = arith.constant 0 : index
    %0 = vector.load %arg1[%c0, %c0_0] : memref<16x16xf32, #tpu.memory_space<vmem>>, vector<16x16xf32>
    %c0_1 = arith.constant 0 : index
    %c0_2 = arith.constant 0 : index
    %1 = vector.load %arg5[%c0_1, %c0_2] : memref<16x32xf32, #tpu.memory_space<vmem>>, vector<16x32xf32>
    %cst = arith.constant dense<0.000000e+00> : vector<16x32xf32>
    %2 = tpu.matmul %0, %1, %cst {dimension_numbers = #tpu.dot_dimension_numbers<[1], [0], [0], [1], [0, 0, 1, 1], [], []>} : vector<16x16xf32>, vector<16x32xf32>, vector<16x32xf32> -> vector<16x32xf32>
    %c0_3 = arith.constant 0 : index
    %c0_4 = arith.constant 0 : index
    %3 = vector.load %arg6[%c0_3, %c0_4] : memref<1x32xf32, #tpu.memory_space<vmem>>, vector<1x32xf32>
    %4 = vector.broadcast %3 : vector<1x32xf32> to vector<16x32xf32>
    %5 = arith.addf %2, %4 : vector<16x32xf32>
    %c0_5 = arith.constant 0 : index
    %c0_6 = arith.constant 0 : index
    %6 = vector.load %arg8[%c0_5, %c0_6] : memref<16x32xf32, #tpu.memory_space<vmem>>, vector<16x32xf32>
    %cst_7 = arith.constant dense<0.000000e+00> : vector<16x32xf32>
    %7 = tpu.matmul %0, %6, %cst_7 {dimension_numbers = #tpu.dot_dimension_numbers<[1], [0], [0], [1], [0, 0, 1, 1], [], []>} : vector<16x16xf32>, vector<16x32xf32>, vector<16x32xf32> -> vector<16x32xf32>
    %c0_8 = arith.constant 0 : index
    %c0_9 = arith.constant 0 : index
    %8 = vector.load %arg9[%c0_8, %c0_9] : memref<1x32xf32, #tpu.memory_space<vmem>>, vector<1x32xf32>
    %9 = vector.broadcast %8 : vector<1x32xf32> to vector<16x32xf32>
    %10 = arith.addf %7, %9 : vector<16x32xf32>
    %c0_10 = arith.constant 0 : index
    %c0_11 = arith.constant 0 : index
    %11 = vector.load %arg11[%c0_10, %c0_11] : memref<16x32xf32, #tpu.memory_space<vmem>>, vector<16x32xf32>
    %cst_12 = arith.constant dense<0.000000e+00> : vector<16x32xf32>
    %12 = tpu.matmul %0, %11, %cst_12 {dimension_numbers = #tpu.dot_dimension_numbers<[1], [0], [0], [1], [0, 0, 1, 1], [], []>} : vector<16x16xf32>, vector<16x32xf32>, vector<16x32xf32> -> vector<16x32xf32>
    %c0_13 = arith.constant 0 : index
    %c0_14 = arith.constant 0 : index
    %13 = vector.load %arg12[%c0_13, %c0_14] : memref<1x32xf32, #tpu.memory_space<vmem>>, vector<1x32xf32>
    %14 = vector.broadcast %13 : vector<1x32xf32> to vector<16x32xf32>
    %15 = arith.addf %12, %14 : vector<16x32xf32>
    %c0_15 = arith.constant 0 : index
    %c0_16 = arith.constant 0 : index
    %16 = vector.load %arg2[%c0_15, %c0_16] : memref<16x32xf32, #tpu.memory_space<vmem>>, vector<16x32xf32>
    %cst_17 = arith.constant dense<0.000000e+00> : vector<16x32xf32>
    %17 = tpu.matmul %0, %16, %cst_17 {dimension_numbers = #tpu.dot_dimension_numbers<[1], [0], [0], [1], [0, 0, 1, 1], [], []>} : vector<16x16xf32>, vector<16x32xf32>, vector<16x32xf32> -> vector<16x32xf32>
    %c0_18 = arith.constant 0 : index
    %c0_19 = arith.constant 0 : index
    %18 = vector.load %arg3[%c0_18, %c0_19] : memref<1x32xf32, #tpu.memory_space<vmem>>, vector<1x32xf32>
    %19 = vector.broadcast %18 : vector<1x32xf32> to vector<16x32xf32>
    %20 = arith.addf %17, %19 : vector<16x32xf32>
    %cst_20 = arith.constant 0.000000e+00 : f32
    %21 = vector.broadcast %cst_20 : f32 to vector<16x32xf32>
    %22 = arith.maximumf %20, %21 : vector<16x32xf32>
    %c0_21 = arith.constant 0 : index
    %c0_22 = arith.constant 0 : index
    %23 = vector.load %arg4[%c0_21, %c0_22] : memref<32x32xf32, #tpu.memory_space<vmem>>, vector<32x32xf32>
    %cst_23 = arith.constant dense<0.000000e+00> : vector<16x32xf32>
    %24 = tpu.matmul %22, %23, %cst_23 {dimension_numbers = #tpu.dot_dimension_numbers<[1], [0], [0], [1], [0, 0, 1, 1], [], []>} : vector<16x32xf32>, vector<32x32xf32>, vector<16x32xf32> -> vector<16x32xf32>
    %25 = arith.addf %24, %5 : vector<16x32xf32>
    %cst_24 = arith.constant 0.000000e+00 : f32
    %26 = vector.broadcast %cst_24 : f32 to vector<16x32xf32>
    %27 = arith.maximumf %25, %26 : vector<16x32xf32>
    %c0_25 = arith.constant 0 : index
    %c0_26 = arith.constant 0 : index
    %28 = vector.load %arg7[%c0_25, %c0_26] : memref<32x32xf32, #tpu.memory_space<vmem>>, vector<32x32xf32>
    %cst_27 = arith.constant dense<0.000000e+00> : vector<16x32xf32>
    %29 = tpu.matmul %27, %28, %cst_27 {dimension_numbers = #tpu.dot_dimension_numbers<[1], [0], [0], [1], [0, 0, 1, 1], [], []>} : vector<16x32xf32>, vector<32x32xf32>, vector<16x32xf32> -> vector<16x32xf32>
    %30 = arith.addf %29, %10 : vector<16x32xf32>
    %cst_28 = arith.constant 0.000000e+00 : f32
    %31 = vector.broadcast %cst_28 : f32 to vector<16x32xf32>
    %32 = arith.maximumf %30, %31 : vector<16x32xf32>
    %c0_29 = arith.constant 0 : index
    %c0_30 = arith.constant 0 : index
    %33 = vector.load %arg10[%c0_29, %c0_30] : memref<32x32xf32, #tpu.memory_space<vmem>>, vector<32x32xf32>
    %cst_31 = arith.constant dense<0.000000e+00> : vector<16x32xf32>
    %34 = tpu.matmul %32, %33, %cst_31 {dimension_numbers = #tpu.dot_dimension_numbers<[1], [0], [0], [1], [0, 0, 1, 1], [], []>} : vector<16x32xf32>, vector<32x32xf32>, vector<16x32xf32> -> vector<16x32xf32>
    %35 = arith.addf %34, %15 : vector<16x32xf32>
    %cst_32 = arith.constant 0.000000e+00 : f32
    %36 = vector.broadcast %cst_32 : f32 to vector<16x32xf32>
    %37 = arith.maximumf %35, %36 : vector<16x32xf32>
    %c0_33 = arith.constant 0 : index
    %c0_34 = arith.constant 0 : index
    %38 = vector.load %arg13[%c0_33, %c0_34] : memref<32x8xf32, #tpu.memory_space<vmem>>, vector<32x8xf32>
    %cst_35 = arith.constant dense<0.000000e+00> : vector<16x8xf32>
    %39 = tpu.matmul %37, %38, %cst_35 {dimension_numbers = #tpu.dot_dimension_numbers<[1], [0], [0], [1], [0, 0, 1, 1], [], []>} : vector<16x32xf32>, vector<32x8xf32>, vector<16x8xf32> -> vector<16x8xf32>
    %c0_36 = arith.constant 0 : index
    %c0_37 = arith.constant 0 : index
    %40 = vector.load %arg14[%c0_36, %c0_37] : memref<1x8xf32, #tpu.memory_space<vmem>>, vector<1x8xf32>
    %41 = vector.broadcast %40 : vector<1x8xf32> to vector<16x8xf32>
    %42 = arith.addf %39, %41 : vector<16x8xf32>
    %c0_38 = arith.constant 0 : index
    %c0_39 = arith.constant 0 : index
    %43 = vector.load %arg15[%c0_38, %c0_39] : memref<16x8xf32, #tpu.memory_space<vmem>>, vector<16x8xf32>
    tpu.vector_store %arg15[%c0_38, %c0_39], %42 {strides = array<i32>} : memref<16x8xf32, #tpu.memory_space<vmem>>, vector<16x8xf32>,
    return
  }
  func.func @transform_0(%arg0: i32) -> (i32, i32) {
    %c0_i32 = arith.constant 0 : i32
    %c0_i32_0 = arith.constant 0 : i32
    return %arg0, %c0_i32 : i32, i32
  }
  func.func @transform_1(%arg0: i32) -> (i32, i32) {
    %c0_i32 = arith.constant 0 : i32
    %c0_i32_0 = arith.constant 0 : i32
    %c0_i32_1 = arith.constant 0 : i32
    return %c0_i32, %c0_i32_0 : i32, i32
  }
  func.func @transform_2(%arg0: i32) -> (i32, i32) {
    %c0_i32 = arith.constant 0 : i32
    %c0_i32_0 = arith.constant 0 : i32
    %c0_i32_1 = arith.constant 0 : i32
    return %c0_i32, %c0_i32_0 : i32, i32
  }
  func.func @transform_3(%arg0: i32) -> (i32, i32) {
    %c0_i32 = arith.constant 0 : i32
    %c0_i32_0 = arith.constant 0 : i32
    %c0_i32_1 = arith.constant 0 : i32
    return %c0_i32, %c0_i32_0 : i32, i32
  }
  func.func @transform_4(%arg0: i32) -> (i32, i32) {
    %c0_i32 = arith.constant 0 : i32
    %c0_i32_0 = arith.constant 0 : i32
    %c0_i32_1 = arith.constant 0 : i32
    return %c0_i32, %c0_i32_0 : i32, i32
  }
  func.func @transform_5(%arg0: i32) -> (i32, i32) {
    %c0_i32 = arith.constant 0 : i32
    %c0_i32_0 = arith.constant 0 : i32
    %c0_i32_1 = arith.constant 0 : i32
    return %c0_i32, %c0_i32_0 : i32, i32
  }
  func.func @transform_6(%arg0: i32) -> (i32, i32) {
    %c0_i32 = arith.constant 0 : i32
    %c0_i32_0 = arith.constant 0 : i32
    %c0_i32_1 = arith.constant 0 : i32
    return %c0_i32, %c0_i32_0 : i32, i32
  }
  func.func @transform_7(%arg0: i32) -> (i32, i32) {
    %c0_i32 = arith.constant 0 : i32
    %c0_i32_0 = arith.constant 0 : i32
    %c0_i32_1 = arith.constant 0 : i32
    return %c0_i32, %c0_i32_0 : i32, i32
  }
  func.func @transform_8(%arg0: i32) -> (i32, i32) {
    %c0_i32 = arith.constant 0 : i32
    %c0_i32_0 = arith.constant 0 : i32
    %c0_i32_1 = arith.constant 0 : i32
    return %c0_i32, %c0_i32_0 : i32, i32
  }
  func.func @transform_9(%arg0: i32) -> (i32, i32) {
    %c0_i32 = arith.constant 0 : i32
    %c0_i32_0 = arith.constant 0 : i32
    %c0_i32_1 = arith.constant 0 : i32
    return %c0_i32, %c0_i32_0 : i32, i32
  }
  func.func @transform_10(%arg0: i32) -> (i32, i32) {
    %c0_i32 = arith.constant 0 : i32
    %c0_i32_0 = arith.constant 0 : i32
    %c0_i32_1 = arith.constant 0 : i32
    return %c0_i32, %c0_i32_0 : i32, i32
  }
  func.func @transform_11(%arg0: i32) -> (i32, i32) {
    %c0_i32 = arith.constant 0 : i32
    %c0_i32_0 = arith.constant 0 : i32
    %c0_i32_1 = arith.constant 0 : i32
    return %c0_i32, %c0_i32_0 : i32, i32
  }
  func.func @transform_12(%arg0: i32) -> (i32, i32) {
    %c0_i32 = arith.constant 0 : i32
    %c0_i32_0 = arith.constant 0 : i32
    %c0_i32_1 = arith.constant 0 : i32
    return %c0_i32, %c0_i32_0 : i32, i32
  }
  func.func @transform_13(%arg0: i32) -> (i32, i32) {
    %c0_i32 = arith.constant 0 : i32
    %c0_i32_0 = arith.constant 0 : i32
    %c0_i32_1 = arith.constant 0 : i32
    return %c0_i32, %c0_i32_0 : i32, i32
  }
  func.func @transform_14(%arg0: i32) -> (i32, i32) {
    %c0_i32 = arith.constant 0 : i32
    %c0_i32_0 = arith.constant 0 : i32
    return %arg0, %c0_i32 : i32, i32
  }
}

</mosaic_0001>

<bundles_post_ra>
// kernel: tpu_custom_call.1
= control target key start
LH: loop header
LB: loop body
LE: loop exit
PB: predicated region body
PF: predicated region fallthrough
CT: control target
= control target key end

     0   :  { %19 = vsyncpa [#allocation3], 0  ;;  %s830_s0 = inlined_call_operand.hbm [shape: f32[16,16], index: 0, kind: input, shape index: {}]   ;;  %s831_s1 = inlined_call_operand.hbm [shape: f32[16,32], index: 1, kind: input, shape index: {}]   ;;  %s832_s2 = inlined_call_operand.vmem [shape: f32[1,32], index: 2, kind: input, shape index: {}]   ;;  %s833_s3 = inlined_call_operand.vmem [shape: f32[32,32], index: 3, kind: input, shape index: {}]   ;;  %s834_s4 = inlined_call_operand.hbm [shape: f32[16,32], index: 4, kind: input, shape index: {}]   ;;  %s835_s5 = inlined_call_operand.vmem [shape: f32[1,32], index: 5, kind: input, shape index: {}]   ;;  %s836_s6 = inlined_call_operand.hbm [shape: f32[32,32], index: 6, kind: input, shape index: {}]   ;;  %s837_s7 = inlined_call_operand.hbm [shape: f32[16,32], index: 7, kind: input, shape index: {}]   ;;  %s838_s8 = inlined_call_operand.vmem [shape: f32[1,32], index: 8, kind: input, shape index: {}]   ;;  %s839_s9 = inlined_call_operand.hbm [shape: f32[32,32], index: 9, kind: input, shape index: {}]   ;;  %s840_s10 = inlined_call_operand.hbm [shape: f32[16,32], index: 10, kind: input, shape index: {}]   ;;  %s841_s11 = inlined_call_operand.vmem [shape: f32[1,32], index: 11, kind: input, shape index: {}]   ;;  %s842_s12 = inlined_call_operand.vmem [shape: f32[32,8], index: 12, kind: input, shape index: {}]   ;;  %s843_s13 = inlined_call_operand.vmem [shape: f32[1,8], index: 13, kind: input, shape index: {}]   ;;  %s844_s14 = inlined_call_operand.vmem [shape: f32[16,8], index: 14, kind: output, shape index: {}]  }
   0x1   :  { %20 = vsyncpa [#allocation5], 0 }
   0x2   :  { %21 = vsyncpa [#allocation8], 0 }
   0x3   :  { %22 = vsyncpa [#allocation11], 0  ;;  %s40_s15 = sshll.u32 %s831_s1, 4  ;;  %s643_s16 = smov [#allocation4]   ;;  %s41_s15 = int_to_ptr.hbm [resolvable:$true] %s40_s15 }
   0x4   :  { %s42_s17 = sshll.u32 %s643_s16, 4  ;;  %s72_s20 = sshll.u32 %s836_s6, 4  ;;  %s43_s17 = int_to_ptr.vmem [resolvable:$true] %s42_s17  ;;  %s73_s20 = int_to_ptr.hbm [resolvable:$true] %s72_s20 }
   0x5   :  { %s644_s21 = smov 128   ;;  %s645_s22 = smov 8  }
   0x6   :  { %48 = dma.hbm_to_vmem [thread:$0]  %s41_s15, 256, %s43_s17, [#allocation5], %s644_s21, %s644_s21, %s645_s22  }
   0x7   :  { %s646_s23 = smov [#allocation7]   ;;  %s100_s1 = sshll.u32 %s839_s9, 4  ;;  %s101_s1 = int_to_ptr.hbm [resolvable:$true] %s100_s1 }
   0x8   :  { %s74_s24 = sshll.u32 %s646_s23, 4  ;;  %s27_s28 = sshll.u32 %s830_s0, 4  ;;  %s75_s24 = int_to_ptr.vmem [resolvable:$true] %s74_s24  ;;  %s28_s28 = int_to_ptr.hbm [resolvable:$true] %s27_s28 }
   0x9   :  { %80 = dma.hbm_to_vmem [thread:$0]  %s73_s20, 512, %s75_s24, [#allocation8], %s644_s21, %s644_s21, %s645_s22  }
   0xa   :  { %s647_s29 = smov [#allocation10]   ;;  %s648_s15 = smov [#allocation2]  }
   0xb   :  { %s102_s30 = sshll.u32 %s647_s29, 4  ;;  %s29_s9 = sshll.u32 %s648_s15, 4  ;;  %s103_s30 = int_to_ptr.vmem [resolvable:$true] %s102_s30  ;;  %s30_s9 = int_to_ptr.vmem [resolvable:$true] %s29_s9 }
   0xc   :  { %108 = dma.hbm_to_vmem [thread:$0]  %s101_s1, 512, %s103_s30, [#allocation11], %s644_s21, %s644_s21, %s645_s22  }
   0xd   :  { %s57_s18 = sshll.u32 %s834_s4, 4  ;;  %s85_s20 = sshll.u32 %s837_s7, 4  ;;  %s58_s18 = int_to_ptr.hbm [resolvable:$true] %s57_s18  ;;  %s86_s20 = int_to_ptr.hbm [resolvable:$true] %s85_s20 }
   0xe   :  { %35 = dma.hbm_to_vmem [thread:$0]  %s28_s28, 256, %s30_s9, [#allocation3], %s644_s21, %s644_s21, %s645_s22  }
   0xf   :  { %s649_s23 = smov [#allocation6]   ;;  %s650_s25 = smov [#allocation9]  }
  0x10   :  { %s59_s24 = sshll.u32 %s649_s23, 4  ;;  %s87_s4 = sshll.u32 %s650_s25, 4  ;;  %s60_s24 = int_to_ptr.vmem [resolvable:$true] %s59_s24  ;;  %s88_s4 = int_to_ptr.vmem [resolvable:$true] %s87_s4 }
  0x11   :  { %65 = dma.hbm_to_vmem [thread:$0]  %s58_s18, 256, %s60_s24, [#allocation5], %s644_s21, %s644_s21, %s645_s22  }
  0x12   :  { %s113_s6 = sshll.u32 %s840_s10, 4  ;;  %s651_s7 = smov [#allocation12]   ;;  %s114_s6 = int_to_ptr.hbm [resolvable:$true] %s113_s6 }
  0x13   :  { %93 = dma.hbm_to_vmem [thread:$0]  %s86_s20, 256, %s88_s4, [#allocation8], %s644_s21, %s644_s21, %s645_s22  }
  0x14   :  { %s115_s27 = sshll.u32 %s651_s7, 4  ;;  %s116_s27 = int_to_ptr.vmem [resolvable:$true] %s115_s27 }
  0x15   :  { %121 = dma.hbm_to_vmem [thread:$0]  %s114_s6, 256, %s116_s27, [#allocation11], %s644_s21, %s644_s21, %s645_s22  }
  0x16   :  { %635 = dma.done.wait [#allocation3], 256  }
  0x17   :  { %636 = vsyncadd [#allocation3], 4294967040 }
  0x18   :  { %637 = dma.done.wait [#allocation5], 512  }
  0x19   :  { %638 = vsyncadd [#allocation5], 4294966784 }
  0x1a   :  { %639 = dma.done.wait [#allocation8], 768  }
  0x1b   :  { %640 = vsyncadd [#allocation8], 4294966528 }
  0x1c   :  { %641 = dma.done.wait [#allocation11], 768  }
  0x1d   :  { %642 = vsyncadd [#allocation11], 4294966528  ;;  %v253_v0 = vld [vmem:[#allocation4 + $0x8] sm:$0xff]  ;;  %v252_v1 = vld [vmem:[#allocation4] sm:$0xff]  ;;  %vm164_vm0 = vcmask 130048   ;;  %vm287_vm1 = vcmask 261120  }
  0x1e   :  { %272 = vmatpush.msra.mxu3 %v253_v0  ;;  %v156_v2 = vld [vmem:[#allocation2] sm:$0xff]  ;;  %v159_v3 = vld [vmem:[#allocation6 + $0x8] sm:$0xff]  ;;  %v286_v5 = vld [vmem:[%s833_s3 + $0x18] sm:$0xff]  ;;  %vm426_vm2 = vcmask 64512  }
  0x1f   :  { %v158_v4 = vld [vmem:[#allocation6] sm:$0xff]  ;;  %185 = vmatpush.msra.mxu0 %v159_v3  ;;  %v285_v6 = vld [vmem:[%s833_s3 + $0x10] sm:$0xff]  ;;  %v284_v7 = vld [vmem:[%s833_s3 + $0x8] sm:$0xff] }
  0x20   :  { %273 = vmatpush.msra.mxu3 %v252_v1  ;;  %v157_v8 = vld [vmem:[#allocation2 + $0x8] sm:$0xff]  ;;  %v283_v9 = vld [vmem:[%s833_s3] sm:$0xff]  ;;  %v195_v10 = vld [vmem:[#allocation9 + $0x8] sm:$0xff] }
  0x21   :  { %443 = vmatmul.msk.f32.vlgmr.msra.gmra.mxu3 %vm164_vm0, %v156_v2  ;;  %186 = vmatpush.msra.mxu0 %v158_v4  ;;  %v194_v11 = vld [vmem:[#allocation9] sm:$0xff]  ;;  %v322_v12 = vld [vmem:[#allocation7 + $0x18] sm:$0xff]  ;;  %v321_v13 = vld [vmem:[#allocation7 + $0x10] sm:$0xff] }
  0x22   :  { %437 = vmatmul.msk.f32.vlgmr.msra.gmra.mxu0 %vm164_vm0, %v156_v2  ;;  %214 = vmatpush.msra.mxu1 %v195_v10  ;;  %v320_v14 = vld [vmem:[#allocation7 + $0x8] sm:$0xff]  ;;  %v462_v15 = vld [vmem:[%s832_s2] ss:$0 sm:$0xff]  ;;  %v319_v22 = vld [vmem:[#allocation7] sm:$0xff] }
  0x23   :  { %306 = vmatpush.msrb.mxu0 %v286_v5  ;;  %v224_v24 = vld [vmem:[#allocation12 + $0x8] sm:$0xff]  ;;  %v223_v25 = vld [vmem:[#allocation12] sm:$0xff]  ;;  %v357_v26 = vld [vmem:[#allocation10 + $0x18] sm:$0xff] }
  0x24   :  { %215 = vmatpush.msra.mxu1 %v194_v11  ;;  %243 = vmatpush.msra.mxu2 %v224_v24  ;;  %v356_v27 = vld [vmem:[#allocation10 + $0x10] sm:$0xff]  ;;  %v355_v28 = vld [vmem:[#allocation10 + $0x8] sm:$0xff]  ;;  %v463_v30 = vld [vmem:[%s835_s5] ss:$0 sm:$0xff] }
  0x25   :  { %307 = vmatpush.msrb.mxu0 %v285_v6  ;;  %439 = vmatmul.msk.f32.vlgmr.msra.gmra.mxu1 %vm164_vm0, %v156_v2  ;;  %v354_v39 = vld [vmem:[#allocation10] sm:$0xff]  ;;  %v392_v41 = vld [vmem:[%s842_s12 + $0x18] sm:$0xff]  ;;  %v391_v42 = vld [vmem:[%s842_s12 + $0x10] sm:$0xff] }
  0x26   :  { %341 = vmatpush.msrb.mxu1 %v322_v12  ;;  %244 = vmatpush.msra.mxu2 %v223_v25  ;;  %v390_v43 = vld [vmem:[%s842_s12 + $0x8] sm:$0xff]  ;;  %v464_v45 = vld [vmem:[%s838_s8] ss:$0 sm:$0xff] }
  0x27   :  { %308 = vmatpush.msrb.mxu0 %v284_v7  ;;  %441 = vmatmul.msk.f32.vlgmr.msra.gmra.mxu2 %vm164_vm0, %v156_v2  ;;  %v389_v54 = vld [vmem:[%s842_s12] sm:$0xff] }
  0x28   :  { %342 = vmatpush.msrb.mxu1 %v321_v13  ;;  %376 = vmatpush.msrb.mxu2 %v357_v26  ;;  %v465_v57 = vld [vmem:[%s841_s11] ss:$0 sm:$0xff] }
  0x29   :  { %444 = vmatmul.msk.f32.gmra.mxu3 %vm164_vm0, %v157_v8  ;;  %309 = vmatpush.msrb.mxu0 %v283_v9  ;;  %v466_v2 = vld [vmem:[%s843_s13] ss:$0 sm:$0xff] }
  0x2a   :  { %438 = vmatmul.msk.f32.gmra.mxu0 %vm164_vm0, %v157_v8  ;;  %343 = vmatpush.msrb.mxu1 %v320_v14 }
  0x2b   :  { %377 = vmatpush.msrb.mxu2 %v356_v27  ;;  %415 = vmatpush.msrb.mxu3 %v392_v41 }
  0x2c   :  { %344 = vmatpush.msrb.mxu1 %v319_v22 }
  0x2d   :  { %440 = vmatmul.msk.f32.gmra.mxu1 %vm164_vm0, %v157_v8  ;;  %378 = vmatpush.msrb.mxu2 %v355_v28 }
  0x2e   :  { %416 = vmatpush.msrb.mxu3 %v391_v42 }
  0x2f   :  { %442 = vmatmul.msk.f32.gmra.mxu2 %vm164_vm0, %v157_v8 }
  0x30   :  { %379 = vmatpush.msrb.mxu2 %v354_v39  ;;  %417 = vmatpush.msrb.mxu3 %v390_v43 }
  0x32   :  { %418 = vmatpush.msrb.mxu3 %v389_v54 }
  0x9f   :  { %v188_v23 = vpop.f32.mrf.mxu0 }
  0xa0   :  { %v189_v31 = vadd.f32 %v463_v30, %v188_v23 }
  0xa2   :  { %v217_v40 = vpop.f32.mrf.mxu1 }
  0xa3   :  { %v218_v46 = vadd.f32 %v464_v45, %v217_v40 }
  0xa4   :  { %v275_v16 = vpop.f32.mrf.mxu3 }
  0xa5   :  { %v276_v17 = vadd.f32 %v462_v15, %v275_v16 }
  0xa7   :  { %v281_v18 = vmax.f32 %v276_v17, 0.0  ;;  %v191_v29 = vpop.f32.mrf.mxu0 }
  0xa8   :  { %v192_v35 = vadd.f32 %v463_v30, %v191_v29 }
  0xa9   :  { %445 = vmatmul.msk.f32.vlgmr.msrb.gmra.mxu0 %vm287_vm1, %v281_v18 }
  0xaa   :  { %v220_v44 = vpop.f32.mrf.mxu1  ;;  %v246_v55 = vpop.f32.mrf.mxu2 }
  0xab   :  { %v221_v50 = vadd.f32 %v464_v45, %v220_v44  ;;  %v247_v58 = vadd.f32 %v465_v57, %v246_v55 }
  0xac   :  { %v278_v19 = vpop.f32.mrf.mxu3 }
  0xad   :  { %v279_v20 = vadd.f32 %v462_v15, %v278_v19 }
  0xaf   :  { %v282_v21 = vmax.f32 %v279_v20, 0.0 }
  0xb1   :  { %446 = vmatmul.msk.f32.gmra.mxu0 %vm287_vm1, %v282_v21 }
  0xb2   :  { %v249_v56 = vpop.f32.mrf.mxu2 }
  0xb3   :  { %v250_v62 = vadd.f32 %v465_v57, %v249_v56 }
 0x126   :  { %v311_v32 = vpop.f32.mrf.mxu0 }
 0x127   :  { %v312_v33 = vadd.f32 %v311_v32, %v189_v31 }
 0x129   :  { %v317_v34 = vmax.f32 %v312_v33, 0.0 }
 0x12b   :  { %447 = vmatmul.msk.f32.vlgmr.msrb.gmra.mxu1 %vm287_vm1, %v317_v34 }
 0x12e   :  { %v314_v36 = vpop.f32.mrf.mxu0 }
 0x12f   :  { %v315_v37 = vadd.f32 %v314_v36, %v192_v35 }
 0x131   :  { %v318_v38 = vmax.f32 %v315_v37, 0.0 }
 0x133   :  { %448 = vmatmul.msk.f32.gmra.mxu1 %vm287_vm1, %v318_v38 }
 0x1a8   :  { %v346_v47 = vpop.f32.mrf.mxu1 }
 0x1a9   :  { %v347_v48 = vadd.f32 %v346_v47, %v218_v46 }
 0x1ab   :  { %v352_v49 = vmax.f32 %v347_v48, 0.0 }
 0x1ad   :  { %449 = vmatmul.msk.f32.vlgmr.msrb.gmra.mxu2 %vm287_vm1, %v352_v49 }
 0x1b0   :  { %v349_v51 = vpop.f32.mrf.mxu1 }
 0x1b1   :  { %v350_v52 = vadd.f32 %v349_v51, %v221_v50 }
 0x1b3   :  { %v353_v53 = vmax.f32 %v350_v52, 0.0 }
 0x1b5   :  { %450 = vmatmul.msk.f32.gmra.mxu2 %vm287_vm1, %v353_v53 }
 0x230   :  { %v381_v59 = vpop.f32.mrf.mxu2 }
 0x231   :  { %v382_v60 = vadd.f32 %v381_v59, %v247_v58 }
 0x233   :  { %v387_v61 = vmax.f32 %v382_v60, 0.0 }
 0x235   :  { %451 = vmatmul.msk.f32.vlgmr.msrb.gmra.mxu3 %vm287_vm1, %v387_v61 }
 0x238   :  { %v384_v63 = vpop.f32.mrf.mxu2 }
 0x239   :  { %v385_v0 = vadd.f32 %v384_v63, %v250_v62 }
 0x23b   :  { %v388_v1 = vmax.f32 %v385_v0, 0.0 }
 0x23d   :  { %452 = vmatmul.msk.f32.gmra.mxu3 %vm287_vm1, %v388_v1 }
 0x2b8   :  { %v420_v3 = vpop.f32.mrf.mxu3 }
 0x2b9   :  { %v421_v4 = vadd.f32 %v466_v2, %v420_v3 }
 0x2bb   :  { %427 = vst.msk [vmem:[%s844_s14] sm:$0xff] %vm426_vm2, %v421_v4 }
 0x2c0   :  { %v423_v5 = vpop.f32.mrf.mxu3 }
 0x2c1   :  { %v424_v6 = vadd.f32 %v466_v2, %v423_v5 }
 0x2c3   :  { %428 = vst.msk [vmem:[%s844_s14 + $0x8] sm:$0xff] %vm426_vm2, %v424_v6 }
 0x2c4   :  { %433 = vsyncpa [#allocation3], 1 }
 0x2c5   :  { %434 = vsyncpa [#allocation5], 1 }
 0x2c6   :  { %435 = vsyncpa [#allocation8], 1 }
 0x2c7   :  { %436 = vsyncpa [#allocation11], 1 }

</bundles_post_ra>
